<compile_context>
chip_gen: v7x
topology: tpu7x:2x2x1
jax: 0.10.0
libtpu: 0.0.40
codegen_flags: <defaults>
</compile_context>

<pallas_src>
import jax
import jax.numpy as jnp
from jax.experimental import pallas as pl
from jax.experimental.pallas import tpu as pltpu


def _round_up(x, m):
    return ((x + m - 1) // m) * m


def _linear_relu_kernel(x_ref, wt_ref, b_ref, o_ref):
    # x_ref : (tm, K_pad)   bf16 row tile of the flattened image features
    # wt_ref: (K_pad, tn)   bf16 column tile of the transposed weight (W^T)
    # b_ref : (1, tn)       f32 bias slice
    # o_ref : (tm, tn)      f32 output tile
    acc = jnp.dot(x_ref[...], wt_ref[...], preferred_element_type=jnp.float32)
    acc = acc + b_ref[...]                      # broadcast (1, tn) over rows
    o_ref[...] = jnp.maximum(acc, 0.0).astype(o_ref.dtype)


def prepare_fc7_params(weight, bias, compute_dtype=jnp.bfloat16):
    """One-time (module-init) parameter prep: transpose, pad K/N to 128, cast.

    weight: (out_dim, in_dim)  -- PyTorch nn.Linear layout
    bias:   (out_dim,)
    Returns:
      weight_t_padded: (K_pad, N_pad) in compute_dtype
      bias_padded:     (1, N_pad) float32
      out_dim:         int
    """
    N, K = weight.shape
    K_pad = _round_up(K, 128)
    N_pad = _round_up(N, 128)
    wt = jnp.asarray(weight, jnp.float32).T                     # (K, N)
    if (K_pad, N_pad) != (K, N):
        wt = jnp.pad(wt, ((0, K_pad - K), (0, N_pad - N)))
    b2d = jnp.asarray(bias, jnp.float32).reshape(1, N)
    if N_pad != N:
        b2d = jnp.pad(b2d, ((0, 0), (0, N_pad - N)))
    return wt.astype(compute_dtype), b2d, N


def finetune_fc7_forward(image, weight_t, bias2d, out_dim, *, tn_cap=512, tm_cap=1024):
    """Linear(in_dim -> out_dim) + ReLU on region features.

    image:    (B, S, in_dim) float32
    weight_t: (K_pad, N_pad) compute_dtype  -- from prepare_fc7_params
    bias2d:   (1, N_pad) float32            -- from prepare_fc7_params
    returns:  (B, S, out_dim) float32
    """
    B, S, K = image.shape
    K_pad, N_pad = weight_t.shape
    assert K <= K_pad, "image feature dim exceeds prepared weight K_pad"
    M = B * S
    compute_dtype = weight_t.dtype
    cbytes = jnp.dtype(compute_dtype).itemsize
    out_dtype = image.dtype

    # ---- tiling -------------------------------------------------------------
    # Rows: keep m_tiles minimal (usually 1) and padding waste within one
    # sublane group. bf16 sublane packing wants tm a multiple of 16.
    row_align = 16 if cbytes < 4 else 8
    m_tiles = pl.cdiv(M, tm_cap)
    tm = _round_up(pl.cdiv(M, m_tiles), row_align)
    M_pad = tm * m_tiles
    # Output columns: largest lane-dense tile <= tn_cap dividing N_pad.
    tn = min(tn_cap, N_pad)
    while N_pad % tn:
        tn -= 128
    n_tiles = N_pad // tn

    # ---- per-call activation prep (only the small x tensor) ------------------
    x2d = image.reshape(M, K).astype(compute_dtype)
    if M_pad != M or K_pad != K:
        x2d = jnp.pad(x2d, ((0, M_pad - M), (0, K_pad - K)))

    # ---- VMEM budget: double-buffered footprint + 30%, 16 MiB..48 MiB --------
    footprint = 2 * (tm * K_pad * cbytes + K_pad * tn * cbytes + tn * 4 + tm * tn * 4)
    vmem_limit = min(48 * 1024 * 1024, max(16 * 1024 * 1024, int(footprint * 1.3)))

    cost = pl.CostEstimate(
        flops=2 * M_pad * K_pad * N_pad,
        transcendentals=0,
        bytes_accessed=(
            n_tiles * M_pad * K_pad * cbytes   # x is re-read once per column tile
            + K_pad * N_pad * cbytes           # weight read once
            + N_pad * 4                        # bias
            + M_pad * N_pad * 4                # output write
        ),
    )

    out2d = pl.pallas_call(
        _linear_relu_kernel,
        out_shape=jax.ShapeDtypeStruct((M_pad, N_pad), out_dtype),
        grid_spec=pltpu.PrefetchScalarGridSpec(
            num_scalar_prefetch=0,
            # N tiles outer, M tiles inner: weight block index constant across
            # the inner loop -> each weight column tile DMA'd exactly once.
            grid=(n_tiles, m_tiles),
            in_specs=[
                pl.BlockSpec((tm, K_pad), lambda j, i: (i, 0)),   # x row tile
                pl.BlockSpec((K_pad, tn), lambda j, i: (0, j)),   # W^T column tile
                pl.BlockSpec((1, tn), lambda j, i: (0, j)),       # bias slice
            ],
            out_specs=pl.BlockSpec((tm, tn), lambda j, i: (i, j)),
        ),
        compiler_params=pltpu.CompilerParams(
            dimension_semantics=("parallel", "parallel"),
            vmem_limit_bytes=vmem_limit,
        ),
        cost_estimate=cost,
    )(x2d, weight_t, bias2d)

    # Skip the slice copy entirely when shapes already divide.
    if M_pad != M or N_pad != out_dim:
        out2d = out2d[:M, :out_dim]
    return out2d.reshape(B, S, out_dim)


def _reference(image, weight, bias):
    return jnp.maximum(jnp.einsum("bsk,nk->bsn", image, weight) + bias, 0.0)


if __name__ == "__main__":
    # Small synthetic shapes consistent with the module's forward: region
    # feature tensor (batch, num_boxes, in_dim) -> (batch, num_boxes, out_dim).
    B, S, IN_DIM, OUT_DIM = 2, 8, 64, 128

    key = jax.random.PRNGKey(0)
    k_img, k_w, k_b = jax.random.split(key, 3)

    image = jax.random.normal(k_img, (B, S, IN_DIM), dtype=jnp.float32)
    # Deterministic synthetic fc7 weights (the real module loads fc7_w.pkl /
    # fc7_b.pkl once at init). PyTorch Linear layout is (out_dim, in_dim).
    weight = jax.random.normal(k_w, (OUT_DIM, IN_DIM), dtype=jnp.float32) * 0.05
    bias = jax.random.normal(k_b, (OUT_DIM,), dtype=jnp.float32) * 0.05

    # Module-init-time prep (transpose + pad + bf16 cast), hoisted out of the
    # per-call path.
    weight_t, bias2d, out_dim = prepare_fc7_params(weight, bias, jnp.bfloat16)

    out = finetune_fc7_forward(image, weight_t, bias2d, out_dim)
    out = jax.block_until_ready(out)

    ref = _reference(image, weight, bias)
    assert out.shape == (B, S, OUT_DIM)
    # bf16 operands -> loosened tolerance vs the f32 reference.
    assert jnp.allclose(out, ref, atol=2e-2, rtol=2e-2), "mismatch vs reference"

    print("KERNEL_OK")
</pallas_src>

<mosaic_0001>
module attributes {stable_mosaic.version = 11 : i64} {
  func.func @_linear_relu_kernel(%arg0: i32, %arg1: i32, %arg2: memref<16x128xbf16, #tpu.memory_space<vmem>>, %arg3: memref<128x128xbf16, #tpu.memory_space<vmem>>, %arg4: memref<1x128xf32, #tpu.memory_space<vmem>>, %arg5: memref<16x128xf32, #tpu.memory_space<vmem>>) attributes {dimension_semantics = [#tpu.dimension_semantics<parallel>, #tpu.dimension_semantics<parallel>], iteration_bounds = array<i64: 1, 1>, scalar_prefetch = 0 : i64, scratch_operands = 0 : i64, tpu.core_type = #tpu.core_type<tc>, window_params = [{transform_indices = @transform_0, window_bounds = array<i64: 16, 128>}, {transform_indices = @transform_1, window_bounds = array<i64: 128, 128>}, {transform_indices = @transform_2, window_bounds = array<i64: 1, 128>}, {transform_indices = @transform_3, window_bounds = array<i64: 16, 128>}]} {
    %c0 = arith.constant 0 : index
    %c0_0 = arith.constant 0 : index
    %0 = vector.load %arg2[%c0, %c0_0] : memref<16x128xbf16, #tpu.memory_space<vmem>>, vector<16x128xbf16>
    %c0_1 = arith.constant 0 : index
    %c0_2 = arith.constant 0 : index
    %1 = vector.load %arg3[%c0_1, %c0_2] : memref<128x128xbf16, #tpu.memory_space<vmem>>, vector<128x128xbf16>
    %cst = arith.constant dense<0.000000e+00> : vector<16x128xf32>
    %2 = tpu.matmul %0, %1, %cst {dimension_numbers = #tpu.dot_dimension_numbers<[1], [0], [0], [1], [0, 0, 1, 1], [], []>} : vector<16x128xbf16>, vector<128x128xbf16>, vector<16x128xf32> -> vector<16x128xf32>
    %c0_3 = arith.constant 0 : index
    %c0_4 = arith.constant 0 : index
    %3 = vector.load %arg4[%c0_3, %c0_4] : memref<1x128xf32, #tpu.memory_space<vmem>>, vector<1x128xf32>
    %4 = vector.broadcast %3 : vector<1x128xf32> to vector<16x128xf32>
    %5 = arith.addf %2, %4 : vector<16x128xf32>
    %cst_5 = arith.constant 0.000000e+00 : f32
    %6 = vector.broadcast %cst_5 : f32 to vector<16x128xf32>
    %7 = arith.maximumf %5, %6 : vector<16x128xf32>
    %c0_6 = arith.constant 0 : index
    %c0_7 = arith.constant 0 : index
    %8 = vector.load %arg5[%c0_6, %c0_7] : memref<16x128xf32, #tpu.memory_space<vmem>>, vector<16x128xf32>
    tpu.vector_store %arg5[%c0_6, %c0_7], %7 {strides = array<i32>} : memref<16x128xf32, #tpu.memory_space<vmem>>, vector<16x128xf32>,
    return
  }
  func.func @transform_0(%arg0: i32, %arg1: i32) -> (i32, i32) {
    %c0_i32 = arith.constant 0 : i32
    %c0_i32_0 = arith.constant 0 : i32
    return %arg1, %c0_i32 : i32, i32
  }
  func.func @transform_1(%arg0: i32, %arg1: i32) -> (i32, i32) {
    %c0_i32 = arith.constant 0 : i32
    %c0_i32_0 = arith.constant 0 : i32
    return %c0_i32, %arg0 : i32, i32
  }
  func.func @transform_2(%arg0: i32, %arg1: i32) -> (i32, i32) {
    %c0_i32 = arith.constant 0 : i32
    %c0_i32_0 = arith.constant 0 : i32
    return %c0_i32, %arg0 : i32, i32
  }
  func.func @transform_3(%arg0: i32, %arg1: i32) -> (i32, i32) {
    %c0_i32 = arith.constant 0 : i32
    return %arg1, %arg0 : i32, i32
  }
}

</mosaic_0001>

<bundles_post_ra>
// kernel: tpu_custom_call.1
= control target key start
LH: loop header
LB: loop body
LE: loop exit
PB: predicated region body
PF: predicated region fallthrough
CT: control target
= control target key end

     0   :  { %8 = vsyncpa [#allocation3], 0  ;;  %s383_s0 = inlined_call_operand.hbm [shape: bf16[16,128], index: 0, kind: input, shape index: {}]   ;;  %s384_s1 = inlined_call_operand.hbm [shape: bf16[128,128], index: 1, kind: input, shape index: {}]   ;;  %s385_s2 = inlined_call_operand.vmem [shape: f32[1,128], index: 2, kind: input, shape index: {}]   ;;  %s386_s3 = inlined_call_operand.hbm [shape: f32[16,128], index: 3, kind: output, shape index: {}]  }
   0x1   :  { %9 = vsyncpa [#allocation6], 0 }
   0x2   :  { %10 = vsyncpa [#allocation4], 0  ;;  %s315_s12 = smov [#allocation2]   ;;  %s243_s16 = scalar_lea.hbm %s383_s0, 128 }
   0x3   :  { %s16_s13 = sshll.u32 %s315_s12, 4  ;;  %p244_p0 = scmp.ne.s32.totalorder %s383_s0, %s243_s16  ;;  %s17_s13 = int_to_ptr.vmem [resolvable:$true] %s16_s13 }
   0x4   :  { %p247_p1 = scmp.lt.u32.totalorder %s243_s16, %s383_s0 }
   0x6   :  { %p249_p2 = pnand %p247_p1, %p244_p0 }
   0x8   :  { %252 = shalt.err (!%p249_p2)
}
   0x9   :  { %s253_s21 = scalar_lea.vmem %s17_s13, 128  ;;  %p258_p4 = scmp.lt.s32.totalorder %s17_s13, %s17_s13 }
   0xa   :  { %p254_p3 = scmp.ne.s32.totalorder %s17_s13, %s253_s21  ;;  %p259_p5 = scmp.lt.s32.totalorder %s253_s21, %s253_s21 }
   0xc   :  { %p260_p6 = por %p259_p5, %p258_p4 }
   0xe   :  { %p261_p7 = pnand %p260_p6, %p254_p3 }
  0x10   :  { %264 = shalt.err (!%p261_p7)
}
  0x11   :  { %s316_s22 = smov 64   ;;  %s317_s23 = smov 4  }
  0x12   :  { %22 = dma.hbm_to_vmem [thread:$0]  %s383_s0, 128, %s17_s13, [#allocation3], %s316_s22, %s316_s22, %s317_s23  }
  0x13   :  { %s318_s26 = smov [#allocation5]   ;;  %s265_s30 = scalar_lea.hbm %s384_s1, 1024 }
  0x14   :  { %s28_s27 = sshll.u32 %s318_s26, 4  ;;  %p266_p8 = scmp.ne.s32.totalorder %s384_s1, %s265_s30  ;;  %s29_s27 = int_to_ptr.vmem [resolvable:$true] %s28_s27 }
  0x15   :  { %p269_p9 = scmp.lt.u32.totalorder %s265_s30, %s384_s1 }
  0x17   :  { %p271_p10 = pnand %p269_p9, %p266_p8 }
  0x19   :  { %274 = shalt.err (!%p271_p10)
}
  0x1a   :  { %s275_s8 = scalar_lea.vmem %s29_s27, 1024  ;;  %p280_p12 = scmp.lt.s32.totalorder %s29_s27, %s29_s27 }
  0x1b   :  { %p276_p11 = scmp.ne.s32.totalorder %s29_s27, %s275_s8  ;;  %p281_p13 = scmp.lt.s32.totalorder %s275_s8, %s275_s8 }
  0x1d   :  { %p282_p0 = por %p281_p13, %p280_p12 }
  0x1f   :  { %p283_p1 = pnand %p282_p0, %p276_p11 }
  0x21   :  { %286 = shalt.err (!%p283_p1)
}
  0x22   :  { %34 = dma.hbm_to_vmem [thread:$0]  %s384_s1, 1024, %s29_s27, [#allocation6], %s316_s22, %s316_s22, %s317_s23  }
  0x23   :  { %309 = dma.done.wait [#allocation3], 128  }
  0x24   :  { %310 = vsyncadd [#allocation3], 4294967168 }
  0x25   :  { %311 = dma.done.wait [#allocation6], 1024  }
  0x26   :  { %312 = vsyncadd [#allocation6], 4294966272  ;;  %v319_v0 = vmov 0.0   ;;  %vm320_vm0 = vmmov 0   ;;  %v234_v1 = vld [vmem:[#allocation5] sm:$0xff]   ;;  %v235_v2 = vld [vmem:[#allocation5 + $0x8] sm:$0xff]  }
  0x27   :  { %205 = vmatprep.subr.bf16.mxu0 %v319_v0  ;;  %221 = vmatprep.mubr.msk.bf16.mxu0 %vm320_vm0, %v319_v0  ;;  %v236_v3 = vld [vmem:[#allocation5 + $0x10] sm:$0xff]   ;;  %v237_v4 = vld [vmem:[#allocation5 + $0x18] sm:$0xff]   ;;  %v238_v5 = vld [vmem:[#allocation5 + $0x20] sm:$0xff]   ;;  %s321_s11 = smov [#allocation7]  }
  0x28   :  { %206 = vmatpush3.bf16.msra.mxu0 %v234_v1  ;;  %v239_v6 = vld [vmem:[#allocation5 + $0x28] sm:$0xff]   ;;  %v240_v7 = vld [vmem:[#allocation5 + $0x30] sm:$0xff]   ;;  %v241_v8 = vld [vmem:[#allocation5 + $0x38] sm:$0xff]   ;;  %s173_s12 = sshll.u32 %s321_s11, 4  ;;  %s174_s12 = int_to_ptr.vmem [resolvable:$true] %s173_s12 }
  0x29   :  { %207 = vmatprep.subr.bf16.mxu0 %v319_v0  ;;  %v242_v9 = vld [vmem:[#allocation2] sm:$0xff]   ;;  %s287_s13 = scalar_lea.vmem %s174_s12, 256  ;;  %p292_p3 = scmp.lt.s32.totalorder %s174_s12, %s174_s12 }
  0x2a   :  { %v186_v10 = vld [vmem:[%s385_s2] ss:$0 sm:$0xff]  ;;  %p288_p2 = scmp.ne.s32.totalorder %s174_s12, %s287_s13  ;;  %p293_p4 = scmp.lt.s32.totalorder %s287_s13, %s287_s13 }
  0x2c   :  { %208 = vmatpush3.bf16.msra.mxu0 %v235_v2  ;;  %p294_p5 = por %p293_p4, %p292_p3 }
  0x2d   :  { %209 = vmatprep.subr.bf16.mxu0 %v319_v0 }
  0x2e   :  { %p295_p6 = pnand %p294_p5, %p288_p2 }
  0x30   :  { %210 = vmatpush3.bf16.msra.mxu0 %v236_v3 }
  0x31   :  { %211 = vmatprep.subr.bf16.mxu0 %v319_v0 }
  0x34   :  { %212 = vmatpush3.bf16.msra.mxu0 %v237_v4 }
  0x35   :  { %213 = vmatprep.subr.bf16.mxu0 %v319_v0 }
  0x38   :  { %214 = vmatpush3.bf16.msra.mxu0 %v238_v5 }
  0x39   :  { %215 = vmatprep.subr.bf16.mxu0 %v319_v0 }
  0x3c   :  { %216 = vmatpush3.bf16.msra.mxu0 %v239_v6 }
  0x3d   :  { %217 = vmatprep.subr.bf16.mxu0 %v319_v0 }
  0x40   :  { %218 = vmatpush3.bf16.msra.mxu0 %v240_v7 }
  0x41   :  { %219 = vmatprep.subr.bf16.mxu0 %v319_v0 }
  0x44   :  { %220 = vmatpush3.bf16.msra.mxu0 %v241_v8 }
  0x47   :  { %222 = vmatmul.mubr.bf16.vlgmr.msra.gmra.mrb[0].mxu0 %v242_v9 }
 0x11a   :  { %v157_v11 = vpop.f32.mrb[0].mxu0 }
 0x11b   :  { %v158_v12 = vadd.f32 %v186_v10, %v157_v11  ;;  %v223_v13 = vpop.f32.mrb[1].mxu0 }
 0x11c   :  { %v160_v14 = vpop.f32.mrb[2].mxu0 }
 0x11d   :  { %v164_v15 = vmax.f32 %v158_v12, 0.0  ;;  %v161_v16 = vadd.f32 %v186_v10, %v160_v14  ;;  %v224_v17 = vpop.f32.mrb[3].mxu0 }
 0x11f   :  { %166 = vst [vmem:[#allocation7] sm:$0xff] %v164_v15  ;;  %v165_v18 = vmax.f32 %v161_v16, 0.0 }
 0x121   :  { %167 = vst [vmem:[#allocation7 + $0x8] sm:$0xff] %v165_v18 }
 0x122   :  { %298 = shalt.err (!%p295_p6)
}
 0x123   :  { %s299_s15 = scalar_lea.hbm %s386_s3, 256 }
 0x124   :  { %p300_p7 = scmp.ne.s32.totalorder %s386_s3, %s299_s15  ;;  %p303_p8 = scmp.lt.u32.totalorder %s299_s15, %s386_s3 }
 0x126   :  { %p305_p9 = pnand %p303_p8, %p300_p7 }
 0x128   :  { %308 = shalt.err (!%p305_p9)
}
 0x129   :  { %s322_s20 = smov 128   ;;  %s323_s21 = smov 8  }
 0x12a   :  { %179 = dma.vmem_to_hbm [thread:$0]  %s174_s12, 256, %s386_s3, [#allocation4], %s322_s20, %s322_s20, %s323_s21  }
 0x12b   :  { %313 = dma.done.wait [#allocation4], 256  }
 0x12c   :  { %314 = vsyncadd [#allocation4], 4294967040 }
 0x12d   :  { %183 = vsyncpa [#allocation3], 1 }
 0x12e   :  { %184 = vsyncpa [#allocation6], 1 }
 0x12f   :  { %185 = vsyncpa [#allocation4], 1 }

</bundles_post_ra>
